<compile_context>
chip_gen: v6e
topology: v6e:2x2x1
jax: 0.10.0
libtpu: 0.0.40
codegen_flags: <defaults>
</compile_context>

<pallas_src>
import functools

import jax
import jax.numpy as jnp
from jax.experimental import pallas as pl
from jax.experimental.pallas import tpu as pltpu


def _round_up(x, m):
    return (x + m - 1) // m * m


def text_encoder_kernel(tok_ref, emb_ref, w_ref, b_ref, out_ref, acc_ref):
    # tok_ref: (TB, S)  int32 VMEM  -- batch tile of token ids
    # emb_ref: (TV, Ep) bf16        -- vocab tile of the embedding table
    # w_ref:   (Ep, Dp) bf16, b_ref: (1, Dp) f32
    # out_ref: (TB, Dp) f32, acc_ref: (TB, Ep) f32 scratch (embedding sums)
    k = pl.program_id(1)

    TB, S = tok_ref.shape
    TV = emb_ref.shape[0]

    @pl.when(k == 0)
    def _():
        acc_ref[...] = jnp.zeros_like(acc_ref)

    # Bag-of-words counts for this (batch tile, vocab tile):
    #   bag[b, v] = #{s : tok[b, s] == k*TV + v}
    # Compare/accumulate in f32 (v5e has no bf16 VPU); each iteration is one
    # full (TB, TV) vectorized compare.
    tok = tok_ref[...]
    iota_v = jax.lax.broadcasted_iota(jnp.int32, (1, TV), 1) + k * TV
    bag = jnp.zeros((TB, TV), jnp.float32)
    for s in range(S):  # S is static; unrolled full-vreg compares
        bag = bag + (tok[:, s:s + 1] == iota_v).astype(jnp.float32)

    # Partial embedding sum: acc += bag @ emb_tile.
    # Counts <= S are exactly representable in bf16 for S <= 256; f32 MXU acc.
    acc_ref[...] += jnp.dot(bag.astype(jnp.bfloat16), emb_ref[...],
                            preferred_element_type=jnp.float32)

    # Final vocab tile: sequence mean + fc layer.
    @pl.when(k == pl.num_programs(1) - 1)
    def _():
        mean = acc_ref[...] * jnp.float32(1.0 / S)                 # (TB, Ep)
        out_ref[...] = jnp.dot(mean.astype(jnp.bfloat16), w_ref[...],
                               preferred_element_type=jnp.float32) + b_ref[...]


def prepare_text_encoder_params(emb_table, fc_w_t, fc_b, *, vocab_tile=1024):
    """Pad to lane-dense sizes and cast to bf16 ONCE (hoisted out of forward)."""
    V, E = emb_table.shape
    D = fc_w_t.shape[1]
    Ep = _round_up(E, 128)
    Dp = _round_up(D, 128)
    Vp = _round_up(V, 128)
    tv = min(vocab_tile, Vp)
    Vp = _round_up(Vp, tv)

    emb_p = jnp.zeros((Vp, Ep), jnp.bfloat16).at[:V, :E].set(
        emb_table.astype(jnp.bfloat16))
    w_p = jnp.zeros((Ep, Dp), jnp.bfloat16).at[:E, :D].set(
        fc_w_t.astype(jnp.bfloat16))
    b_p = jnp.zeros((1, Dp), jnp.float32).at[:, :D].set(
        fc_b.reshape(1, D).astype(jnp.float32))
    return emb_p, w_p, b_p


@functools.partial(jax.jit, static_argnames=("out_dim", "vocab_tile"))
def text_encoder_forward(tokens, emb_p, w_p, b_p, *, out_dim, vocab_tile=1024):
    """tokens (B,S) int; emb_p/w_p/b_p from prepare_text_encoder_params."""
    B, S = tokens.shape
    Vp, Ep = emb_p.shape
    Dp = w_p.shape[1]

    # Batch tiling: TB rows per grid step (sublane-dense, up to 128 rows).
    Bp = _round_up(B, 8)
    TB = min(128, Bp)
    Bp = _round_up(Bp, TB)
    tok_p = jnp.zeros((Bp, S), jnp.int32).at[:B, :].set(tokens.astype(jnp.int32))

    # Vocab tiling: stream the embedding table in (TV, Ep) tiles.
    TV = min(vocab_tile, Vp)
    grid = (Bp // TB, Vp // TV)

    # VMEM budget: double-buffered pipelined blocks + accumulator scratch,
    # with 2x headroom, capped below v7x's 64 MiB physical VMEM.
    block_bytes = (TB * S * 4 + TV * Ep * 2 + Ep * Dp * 2 + Dp * 4
                   + TB * Dp * 4)
    needed = 2 * block_bytes + TB * Ep * 4
    vmem_limit = min(max(2 * needed, 16 * 1024 * 1024), 64 * 1024 * 1024)

    flops = 2 * Bp * (Vp * Ep + Ep * Dp)
    bytes_accessed = (tok_p.size * 4 + emb_p.size * 2 + w_p.size * 2
                      + b_p.size * 4 + Bp * Dp * 4)

    grid_spec = pltpu.PrefetchScalarGridSpec(
        num_scalar_prefetch=0,
        grid=grid,
        in_specs=[
            pl.BlockSpec((TB, S), lambda i, k: (i, 0)),
            pl.BlockSpec((TV, Ep), lambda i, k: (k, 0)),
            pl.BlockSpec((Ep, Dp), lambda i, k: (0, 0)),
            pl.BlockSpec((1, Dp), lambda i, k: (0, 0)),
        ],
        out_specs=pl.BlockSpec((TB, Dp), lambda i, k: (i, 0)),
        scratch_shapes=[pltpu.VMEM((TB, Ep), jnp.float32)],
    )

    out_padded = pl.pallas_call(
        text_encoder_kernel,
        out_shape=jax.ShapeDtypeStruct((Bp, Dp), jnp.float32),
        grid_spec=grid_spec,
        compiler_params=pltpu.CompilerParams(
            dimension_semantics=("parallel", "arbitrary"),
            vmem_limit_bytes=vmem_limit),
        cost_estimate=pl.CostEstimate(flops=flops, transcendentals=0,
                                      bytes_accessed=bytes_accessed),
    )(tok_p, emb_p, w_p, b_p)

    return out_padded[:B, :out_dim]


if __name__ == "__main__":
    # Small, module-consistent shapes: vocab=16, txt_enc_dim=32, batch=2, seq=8.
    B, S, V, E = 2, 8, 16, 32
    D = E  # fc: Linear(in_dim=E, txt_enc_dim=E)

    key = jax.random.PRNGKey(0)
    k_tok, k_emb, k_w, k_b = jax.random.split(key, 4)

    tokens = jax.random.randint(k_tok, (B, S), 0, V, dtype=jnp.int32)
    emb_table = jax.random.normal(k_emb, (V, E), dtype=jnp.float32)        # N(0,1)
    bound = 1.0 / (E ** 0.5)
    fc_w_t = jax.random.uniform(k_w, (E, D), jnp.float32, -bound, bound)   # (in, out)
    fc_b = jax.random.uniform(k_b, (D,), jnp.float32, -bound, bound)

    # Parameter padding/casting is done once, outside the forward path.
    emb_p, w_p, b_p = prepare_text_encoder_params(emb_table, fc_w_t, fc_b)

    out = text_encoder_forward(tokens, emb_p, w_p, b_p, out_dim=D)
    out = jax.block_until_ready(out)

    # Reference in plain JAX (f32 weights); kernel uses bf16 weights -> loose tol.
    ref = jnp.take(emb_table, tokens, axis=0).mean(axis=1) @ fc_w_t + fc_b[None, :]
    assert out.shape == (B, D)
    assert jnp.allclose(out, ref, atol=2e-2, rtol=2e-2), "mismatch vs reference"

    print("KERNEL_OK")
</pallas_src>

<mosaic_0001>
module attributes {stable_mosaic.version = 11 : i64} {
  func.func @text_encoder_kernel(%arg0: i32, %arg1: i32, %arg2: memref<8x8xi32, #tpu.memory_space<vmem>>, %arg3: memref<128x128xbf16, #tpu.memory_space<vmem>>, %arg4: memref<128x128xbf16, #tpu.memory_space<vmem>>, %arg5: memref<1x128xf32, #tpu.memory_space<vmem>>, %arg6: memref<8x128xf32, #tpu.memory_space<vmem>>, %arg7: memref<8x128xf32, #tpu.memory_space<vmem>>) attributes {dimension_semantics = [#tpu.dimension_semantics<parallel>, #tpu.dimension_semantics<arbitrary>], iteration_bounds = array<i64: 1, 1>, scalar_prefetch = 0 : i64, scratch_operands = 1 : i64, tpu.core_type = #tpu.core_type<tc>, window_params = [{transform_indices = @transform_0, window_bounds = array<i64: 8, 8>}, {transform_indices = @transform_1, window_bounds = array<i64: 128, 128>}, {pipeline_mode = #tpu.pipeline_mode<synchronous>, transform_indices = @transform_2, window_bounds = array<i64: 128, 128>}, {pipeline_mode = #tpu.pipeline_mode<synchronous>, transform_indices = @transform_3, window_bounds = array<i64: 1, 128>}, {transform_indices = @transform_4, window_bounds = array<i64: 8, 128>}]} {
    %c0_i32 = arith.constant 0 : i32
    %0 = arith.cmpi eq, %arg1, %c0_i32 : i32
    %1 = arith.extui %0 : i1 to i32
    %c0_i32_0 = arith.constant 0 : i32
    %2 = arith.cmpi ne, %1, %c0_i32_0 : i32
    scf.if %2 {
      %cst_11 = arith.constant 0.000000e+00 : f32
      %74 = vector.broadcast %cst_11 : f32 to vector<8x128xf32>
      %c0_12 = arith.constant 0 : index
      %c0_13 = arith.constant 0 : index
      %75 = vector.load %arg7[%c0_12, %c0_13] : memref<8x128xf32, #tpu.memory_space<vmem>>, vector<8x128xf32>
      tpu.vector_store %arg7[%c0_12, %c0_13], %74 {strides = array<i32>} : memref<8x128xf32, #tpu.memory_space<vmem>>, vector<8x128xf32>,
    } else {
    }
    %c0 = arith.constant 0 : index
    %c0_1 = arith.constant 0 : index
    %3 = vector.load %arg2[%c0, %c0_1] : memref<8x8xi32, #tpu.memory_space<vmem>>, vector<8x8xi32>
    %4 = tpu.iota {dimensions = array<i32: 1>} : vector<1x128xi32>
    %c128_i32 = arith.constant 128 : i32
    %5 = arith.muli %arg1, %c128_i32 : i32
    %6 = vector.broadcast %5 : i32 to vector<1x128xi32>
    %7 = arith.addi %4, %6 : vector<1x128xi32>
    %cst = arith.constant 0.000000e+00 : f32
    %8 = vector.broadcast %cst : f32 to vector<8x128xf32>
    %9 = vector.extract_strided_slice %3 {offsets = [0, 0], sizes = [8, 1], strides = [1, 1]} : vector<8x8xi32> to vector<8x1xi32>
    %10 = vector.broadcast %9 : vector<8x1xi32> to vector<8x128xi32>
    %11 = vector.broadcast %7 : vector<1x128xi32> to vector<8x128xi32>
    %12 = arith.cmpi eq, %10, %11 : vector<8x128xi32>
    %13 = arith.extui %12 : vector<8x128xi1> to vector<8x128xi32>
    %14 = arith.sitofp %13 : vector<8x128xi32> to vector<8x128xf32>
    %15 = arith.addf %8, %14 : vector<8x128xf32>
    %16 = vector.extract_strided_slice %3 {offsets = [0, 1], sizes = [8, 1], strides = [1, 1]} : vector<8x8xi32> to vector<8x1xi32>
    %17 = vector.broadcast %16 : vector<8x1xi32> to vector<8x128xi32>
    %18 = vector.broadcast %7 : vector<1x128xi32> to vector<8x128xi32>
    %19 = arith.cmpi eq, %17, %18 : vector<8x128xi32>
    %20 = arith.extui %19 : vector<8x128xi1> to vector<8x128xi32>
    %21 = arith.sitofp %20 : vector<8x128xi32> to vector<8x128xf32>
    %22 = arith.addf %15, %21 : vector<8x128xf32>
    %23 = vector.extract_strided_slice %3 {offsets = [0, 2], sizes = [8, 1], strides = [1, 1]} : vector<8x8xi32> to vector<8x1xi32>
    %24 = vector.broadcast %23 : vector<8x1xi32> to vector<8x128xi32>
    %25 = vector.broadcast %7 : vector<1x128xi32> to vector<8x128xi32>
    %26 = arith.cmpi eq, %24, %25 : vector<8x128xi32>
    %27 = arith.extui %26 : vector<8x128xi1> to vector<8x128xi32>
    %28 = arith.sitofp %27 : vector<8x128xi32> to vector<8x128xf32>
    %29 = arith.addf %22, %28 : vector<8x128xf32>
    %30 = vector.extract_strided_slice %3 {offsets = [0, 3], sizes = [8, 1], strides = [1, 1]} : vector<8x8xi32> to vector<8x1xi32>
    %31 = vector.broadcast %30 : vector<8x1xi32> to vector<8x128xi32>
    %32 = vector.broadcast %7 : vector<1x128xi32> to vector<8x128xi32>
    %33 = arith.cmpi eq, %31, %32 : vector<8x128xi32>
    %34 = arith.extui %33 : vector<8x128xi1> to vector<8x128xi32>
    %35 = arith.sitofp %34 : vector<8x128xi32> to vector<8x128xf32>
    %36 = arith.addf %29, %35 : vector<8x128xf32>
    %37 = vector.extract_strided_slice %3 {offsets = [0, 4], sizes = [8, 1], strides = [1, 1]} : vector<8x8xi32> to vector<8x1xi32>
    %38 = vector.broadcast %37 : vector<8x1xi32> to vector<8x128xi32>
    %39 = vector.broadcast %7 : vector<1x128xi32> to vector<8x128xi32>
    %40 = arith.cmpi eq, %38, %39 : vector<8x128xi32>
    %41 = arith.extui %40 : vector<8x128xi1> to vector<8x128xi32>
    %42 = arith.sitofp %41 : vector<8x128xi32> to vector<8x128xf32>
    %43 = arith.addf %36, %42 : vector<8x128xf32>
    %44 = vector.extract_strided_slice %3 {offsets = [0, 5], sizes = [8, 1], strides = [1, 1]} : vector<8x8xi32> to vector<8x1xi32>
    %45 = vector.broadcast %44 : vector<8x1xi32> to vector<8x128xi32>
    %46 = vector.broadcast %7 : vector<1x128xi32> to vector<8x128xi32>
    %47 = arith.cmpi eq, %45, %46 : vector<8x128xi32>
    %48 = arith.extui %47 : vector<8x128xi1> to vector<8x128xi32>
    %49 = arith.sitofp %48 : vector<8x128xi32> to vector<8x128xf32>
    %50 = arith.addf %43, %49 : vector<8x128xf32>
    %51 = vector.extract_strided_slice %3 {offsets = [0, 6], sizes = [8, 1], strides = [1, 1]} : vector<8x8xi32> to vector<8x1xi32>
    %52 = vector.broadcast %51 : vector<8x1xi32> to vector<8x128xi32>
    %53 = vector.broadcast %7 : vector<1x128xi32> to vector<8x128xi32>
    %54 = arith.cmpi eq, %52, %53 : vector<8x128xi32>
    %55 = arith.extui %54 : vector<8x128xi1> to vector<8x128xi32>
    %56 = arith.sitofp %55 : vector<8x128xi32> to vector<8x128xf32>
    %57 = arith.addf %50, %56 : vector<8x128xf32>
    %58 = vector.extract_strided_slice %3 {offsets = [0, 7], sizes = [8, 1], strides = [1, 1]} : vector<8x8xi32> to vector<8x1xi32>
    %59 = vector.broadcast %58 : vector<8x1xi32> to vector<8x128xi32>
    %60 = vector.broadcast %7 : vector<1x128xi32> to vector<8x128xi32>
    %61 = arith.cmpi eq, %59, %60 : vector<8x128xi32>
    %62 = arith.extui %61 : vector<8x128xi1> to vector<8x128xi32>
    %63 = arith.sitofp %62 : vector<8x128xi32> to vector<8x128xf32>
    %64 = arith.addf %57, %63 : vector<8x128xf32>
    %c0_2 = arith.constant 0 : index
    %c0_3 = arith.constant 0 : index
    %65 = vector.load %arg7[%c0_2, %c0_3] : memref<8x128xf32, #tpu.memory_space<vmem>>, vector<8x128xf32>
    %66 = arith.truncf %64 : vector<8x128xf32> to vector<8x128xbf16>
    %c0_4 = arith.constant 0 : index
    %c0_5 = arith.constant 0 : index
    %67 = vector.load %arg3[%c0_4, %c0_5] : memref<128x128xbf16, #tpu.memory_space<vmem>>, vector<128x128xbf16>
    %cst_6 = arith.constant dense<0.000000e+00> : vector<8x128xf32>
    %68 = tpu.matmul %66, %67, %cst_6 {dimension_numbers = #tpu.dot_dimension_numbers<[1], [0], [0], [1], [0, 0, 1, 1], [], []>} : vector<8x128xbf16>, vector<128x128xbf16>, vector<8x128xf32> -> vector<8x128xf32>
    %69 = arith.addf %65, %68 : vector<8x128xf32>
    %c0_7 = arith.constant 0 : index
    %c0_8 = arith.constant 0 : index
    %70 = vector.load %arg7[%c0_7, %c0_8] : memref<8x128xf32, #tpu.memory_space<vmem>>, vector<8x128xf32>
    tpu.vector_store %arg7[%c0_7, %c0_8], %69 {strides = array<i32>} : memref<8x128xf32, #tpu.memory_space<vmem>>, vector<8x128xf32>,
    %c0_i32_9 = arith.constant 0 : i32
    %71 = arith.cmpi eq, %arg1, %c0_i32_9 : i32
    %72 = arith.extui %71 : i1 to i32
    %c0_i32_10 = arith.constant 0 : i32
    %73 = arith.cmpi ne, %72, %c0_i32_10 : i32
    scf.if %73 {
      %c0_11 = arith.constant 0 : index
      %c0_12 = arith.constant 0 : index
      %74 = vector.load %arg7[%c0_11, %c0_12] : memref<8x128xf32, #tpu.memory_space<vmem>>, vector<8x128xf32>
      %cst_13 = arith.constant 1.250000e-01 : f32
      %75 = vector.broadcast %cst_13 : f32 to vector<8x128xf32>
      %76 = arith.mulf %74, %75 : vector<8x128xf32>
      %77 = arith.truncf %76 : vector<8x128xf32> to vector<8x128xbf16>
      %c0_14 = arith.constant 0 : index
      %c0_15 = arith.constant 0 : index
      %78 = vector.load %arg4[%c0_14, %c0_15] : memref<128x128xbf16, #tpu.memory_space<vmem>>, vector<128x128xbf16>
      %cst_16 = arith.constant dense<0.000000e+00> : vector<8x128xf32>
      %79 = tpu.matmul %77, %78, %cst_16 {dimension_numbers = #tpu.dot_dimension_numbers<[1], [0], [0], [1], [0, 0, 1, 1], [], []>} : vector<8x128xbf16>, vector<128x128xbf16>, vector<8x128xf32> -> vector<8x128xf32>
      %c0_17 = arith.constant 0 : index
      %c0_18 = arith.constant 0 : index
      %80 = vector.load %arg5[%c0_17, %c0_18] : memref<1x128xf32, #tpu.memory_space<vmem>>, vector<1x128xf32>
      %81 = vector.broadcast %80 : vector<1x128xf32> to vector<8x128xf32>
      %82 = arith.addf %79, %81 : vector<8x128xf32>
      %c0_19 = arith.constant 0 : index
      %c0_20 = arith.constant 0 : index
      %83 = vector.load %arg6[%c0_19, %c0_20] : memref<8x128xf32, #tpu.memory_space<vmem>>, vector<8x128xf32>
      tpu.vector_store %arg6[%c0_19, %c0_20], %82 {strides = array<i32>} : memref<8x128xf32, #tpu.memory_space<vmem>>, vector<8x128xf32>,
    } else {
    }
    return
  }
  func.func @transform_0(%arg0: i32, %arg1: i32) -> (i32, i32) {
    %c0_i32 = arith.constant 0 : i32
    %c0_i32_0 = arith.constant 0 : i32
    return %arg0, %c0_i32 : i32, i32
  }
  func.func @transform_1(%arg0: i32, %arg1: i32) -> (i32, i32) {
    %c0_i32 = arith.constant 0 : i32
    %c0_i32_0 = arith.constant 0 : i32
    return %arg1, %c0_i32 : i32, i32
  }
  func.func @transform_2(%arg0: i32, %arg1: i32) -> (i32, i32) {
    %c0_i32 = arith.constant 0 : i32
    %c0_i32_0 = arith.constant 0 : i32
    %c0_i32_1 = arith.constant 0 : i32
    return %c0_i32, %c0_i32_0 : i32, i32
  }
  func.func @transform_3(%arg0: i32, %arg1: i32) -> (i32, i32) {
    %c0_i32 = arith.constant 0 : i32
    %c0_i32_0 = arith.constant 0 : i32
    %c0_i32_1 = arith.constant 0 : i32
    return %c0_i32, %c0_i32_0 : i32, i32
  }
  func.func @transform_4(%arg0: i32, %arg1: i32) -> (i32, i32) {
    %c0_i32 = arith.constant 0 : i32
    %c0_i32_0 = arith.constant 0 : i32
    return %arg0, %c0_i32 : i32, i32
  }
}

</mosaic_0001>

<bundles_post_ra>
// kernel: text_encoder_forward.1
= control target key start
LH: loop header
LB: loop body
LE: loop exit
PB: predicated region body
PF: predicated region fallthrough
CT: control target
= control target key end

     0   :  { %9 = vsyncpa [#allocation4], 0  ;;  %s591_s0 = inlined_call_operand.vmem [shape: s32[8,8], index: 0, kind: input, shape index: {}]   ;;  %s592_s1 = inlined_call_operand.hbm [shape: bf16[128,128], index: 1, kind: input, shape index: {}]   ;;  %s593_s2 = inlined_call_operand.hbm [shape: bf16[128,128], index: 2, kind: input, shape index: {}]   ;;  %s594_s3 = inlined_call_operand.vmem [shape: f32[1,128], index: 3, kind: input, shape index: {}]   ;;  %s595_s4 = inlined_call_operand.vmem [shape: f32[8,128], index: 4, kind: output, shape index: {}]  }
   0x1   :  { %10 = vsyncpa [#allocation6], 0  ;;  %s511_s15 = smov [#allocation3]  }
   0x2   :  { %s18_s16 = sshll.u32 %s511_s15, 4  ;;  %s19_s16 = int_to_ptr.vmem [resolvable:$true] %s18_s16 }
   0x3   :  { %s475_s17 = scalar_lea.vmem %s19_s16, 1024  ;;  %p480_p1 = scmp.lt.s32.totalorder %s19_s16, %s19_s16 }
   0x4   :  { %p476_p0 = scmp.ne.s32.totalorder %s19_s16, %s475_s17  ;;  %p481_p2 = scmp.lt.s32.totalorder %s475_s17, %s475_s17 }
   0x6   :  { %p482_p3 = por %p481_p2, %p480_p1 }
   0x8   :  { %p483_p4 = pnand %p482_p3, %p476_p0 }
   0xa   :  { %486 = shalt.err (!%p483_p4)
}
   0xb   :  { %s512_s18 = smov 64   ;;  %s513_s19 = smov 4  }
   0xc   :  { %24 = dma.hbm_to_vmem [thread:$0]  %s592_s1, 1024, %s19_s16, [#allocation4], %s512_s18, %s512_s18, %s513_s19  }
   0xd   :  { %s514_s22 = smov [#allocation5]  }
   0xe   :  { %s30_s23 = sshll.u32 %s514_s22, 4  ;;  %s31_s23 = int_to_ptr.vmem [resolvable:$true] %s30_s23 }
   0xf   :  { %s495_s24 = scalar_lea.vmem %s31_s23, 1024  ;;  %p500_p6 = scmp.lt.s32.totalorder %s31_s23, %s31_s23 }
  0x10   :  { %p496_p5 = scmp.ne.s32.totalorder %s31_s23, %s495_s24  ;;  %p501_p7 = scmp.lt.s32.totalorder %s495_s24, %s495_s24 }
  0x12   :  { %p502_p8 = por %p501_p7, %p500_p6 }
  0x14   :  { %p503_p9 = pnand %p502_p8, %p496_p5 }
  0x16   :  { %506 = shalt.err (!%p503_p9)
}
  0x17   :  { %36 = dma.hbm_to_vmem [thread:$0]  %s593_s2, 1024, %s31_s23, [#allocation6], %s512_s18, %s512_s18, %s513_s19  }
  0x18   :  { %507 = dma.done.wait [#allocation4], 1024  }
  0x19   :  { %508 = vsyncadd [#allocation4], 4294966272 }
  0x1a   :  { %509 = dma.done.wait [#allocation6], 1024  }
  0x1b   :  { %510 = vsyncadd [#allocation6], 4294966272  ;;  %v515_v0 = vmov 2   ;;  %v516_v1 = vmov 0   ;;  %v517_v2 = vmov 0.0   ;;  %v51_v3 = vld [vmem:[%s591_s0] sm:$0xff]  ;;  %v52_v25 = vlaneseq }
  0x1c   :  { %444 = vset.pattern.permute.xlu1 %v515_v0  ;;  %442 = vset.pattern.permute.xlu0 %v516_v1  ;;  %v451_v4 = vld [vmem:[#allocation3 + $0x38] sm:$0xff]   ;;  %v452_v5 = vld [vmem:[#allocation3 + $0x30] sm:$0xff]   ;;  %v518_v6 = vmov 3   ;;  %v519_v7 = vmov 1   ;;  %v453_v8 = vld [vmem:[#allocation3 + $0x28] sm:$0xff]   ;;  %v520_v9 = vmov 4  }
  0x1d   :  { %388 = vmatprep.subr.bf16.mxu0 %v517_v2  ;;  %408 = vmatprep.subr.bf16.mxu1 %v517_v2  ;;  %v521_v10 = vmov 5   ;;  %v454_v11 = vld [vmem:[#allocation3 + $0x20] sm:$0xff]   ;;  %v522_v12 = vmov 6   ;;  %v523_v13 = vmov 7   ;;  %v455_v14 = vld [vmem:[#allocation3 + $0x18] sm:$0xff]   ;;  %v456_v15 = vld [vmem:[#allocation3 + $0x10] sm:$0xff]  }
  0x1e   :  { %72 = vperm.xlu1 %444, %v51_v3   ;;  %58 = vperm.xlu0 %442, %v51_v3   ;;  %vm524_vm0 = vmmov 0   ;;  %v459_v16 = vld [vmem:[#allocation5 + $0x38] sm:$0xff]   ;;  %v457_v17 = vld [vmem:[#allocation3 + $0x8] sm:$0xff]   ;;  %v460_v18 = vld [vmem:[#allocation5 + $0x30] sm:$0xff]   ;;  %v53_v28 = vand.u32 127, %v52_v25 }
  0x1f   :  { %389 = vmatpush3.bf16.msra.mxu0 %v451_v4  ;;  %404 = vmatprep.mubr.msk.bf16.mxu0 %vm524_vm0, %v517_v2  ;;  %v458_v19 = vld [vmem:[#allocation3] sm:$0xff]   ;;  %v461_v20 = vld [vmem:[#allocation5 + $0x28] sm:$0xff]   ;;  %v463_v22 = vld [vmem:[#allocation5 + $0x18] sm:$0xff]  }
  0x20   :  { %390 = vmatprep.subr.bf16.mxu0 %v517_v2  ;;  %424 = vmatprep.mubr.msk.bf16.mxu1 %vm524_vm0, %v517_v2  ;;  %v462_v21 = vld [vmem:[#allocation5 + $0x20] sm:$0xff]   ;;  %v464_v23 = vld [vmem:[#allocation5 + $0x10] sm:$0xff]   ;;  %v465_v24 = vld [vmem:[#allocation5 + $0x8] sm:$0xff]  }
  0x21   :  { %409 = vmatpush3.bf16.msra.mxu1 %v459_v16  ;;  %v466_v51 = vld [vmem:[#allocation5] sm:$0xff]  }
  0x22   :  { %445 = vset.pattern.permute.xlu1 %v518_v6  ;;  %443 = vset.pattern.permute.xlu0 %v519_v7  ;;  %v361_v58 = vld [vmem:[%s594_s3] ss:$0 sm:$0xff] }
  0x23   :  { %79 = vperm.xlu1 %445, %v51_v3   ;;  %65 = vperm.xlu0 %443, %v51_v3  }
  0x24   :  { %391 = vmatpush3.bf16.msra.mxu0 %v452_v5  ;;  %410 = vmatprep.subr.bf16.mxu1 %v517_v2 }
  0x25   :  { %392 = vmatprep.subr.bf16.mxu0 %v517_v2  ;;  %411 = vmatpush3.bf16.msra.mxu1 %v460_v18 }
  0x26   :  { %412 = vmatprep.subr.bf16.mxu1 %v517_v2 }
  0x27   :  { %446 = vset.pattern.permute.xlu1 %v520_v9  ;;  %447 = vset.pattern.permute.xlu0 %v521_v10 }
  0x28   :  { %86 = vperm.xlu1 %446, %v51_v3   ;;  %93 = vperm.xlu0 %447, %v51_v3  }
  0x29   :  { %393 = vmatpush3.bf16.msra.mxu0 %v453_v8  ;;  %413 = vmatpush3.bf16.msra.mxu1 %v461_v20 }
  0x2a   :  { %394 = vmatprep.subr.bf16.mxu0 %v517_v2  ;;  %414 = vmatprep.subr.bf16.mxu1 %v517_v2 }
  0x2c   :  { %448 = vset.pattern.permute.xlu1 %v522_v12  ;;  %450 = vset.pattern.permute.xlu0 %v523_v13 }
  0x2d   :  { %100 = vperm.xlu1 %448, %v51_v3   ;;  %395 = vmatpush3.bf16.msra.mxu0 %v454_v11 }
  0x2e   :  { %396 = vmatprep.subr.bf16.mxu0 %v517_v2  ;;  %415 = vmatpush3.bf16.msra.mxu1 %v462_v21 }
  0x2f   :  { %416 = vmatprep.subr.bf16.mxu1 %v517_v2 }
  0x31   :  { %449 = vset.pattern.permute.xlu1 %v523_v13  ;;  %397 = vmatpush3.bf16.msra.mxu0 %v455_v14 }
  0x32   :  { %107 = vperm.xlu1 %449, %v51_v3   ;;  %398 = vmatprep.subr.bf16.mxu0 %v517_v2 }
  0x33   :  { %417 = vmatpush3.bf16.msra.mxu1 %v463_v22 }
  0x34   :  { %418 = vmatprep.subr.bf16.mxu1 %v517_v2 }
  0x35   :  { %399 = vmatpush3.bf16.msra.mxu0 %v456_v15 }
  0x36   :  { %400 = vmatprep.subr.bf16.mxu0 %v517_v2 }
  0x37   :  { %419 = vmatpush3.bf16.msra.mxu1 %v464_v23 }
  0x38   :  { %420 = vmatprep.subr.bf16.mxu1 %v517_v2 }
  0x39   :  { %401 = vmatpush3.bf16.msra.mxu0 %v457_v17 }
  0x3a   :  { %402 = vmatprep.subr.bf16.mxu0 %v517_v2 }
  0x3b   :  { %421 = vmatpush3.bf16.msra.mxu1 %v465_v24 }
  0x3c   :  { %422 = vmatprep.subr.bf16.mxu1 %v517_v2 }
  0x3d   :  { %403 = vmatpush3.bf16.msra.mxu0 %v458_v19 }
  0x3f   :  { %423 = vmatpush3.bf16.msra.mxu1 %v466_v51 }
  0x99   :  { %v73_v26 = vpop.permute.xlu1 %72  ;;  %v59_v27 = vpop.permute.xlu0 %58 }
  0x9a   :  { %vm60_vm1 = vcmp.eq.s32.totalorder %v59_v27, %v53_v28  ;;  %vm74_vm2 = vcmp.eq.s32.totalorder %v73_v26, %v53_v28 }
  0x9b   :  { %v345_v31 = vsel %vm60_vm1, 1.0, %v517_v2  ;;  %v347_v34 = vsel %vm74_vm2, 1.0, %v517_v2 }
  0x9e   :  { %v80_v29 = vpop.permute.xlu1 %79  ;;  %v66_v30 = vpop.permute.xlu0 %65 }
  0x9f   :  { %vm67_vm3 = vcmp.eq.s32.totalorder %v66_v30, %v53_v28  ;;  %vm81_vm4 = vcmp.eq.s32.totalorder %v80_v29, %v53_v28 }
  0xa0   :  { %v346_v32 = vsel %vm67_vm3, 1.0, %v517_v2  ;;  %v348_v38 = vsel %vm81_vm4, 1.0, %v517_v2 }
  0xa1   :  { %v70_v33 = vadd.f32 %v346_v32, %v345_v31 }
  0xa3   :  { %v77_v35 = vadd.f32 %v347_v34, %v70_v33  ;;  %v87_v36 = vpop.permute.xlu1 %86  ;;  %v94_v37 = vpop.permute.xlu0 %93 }
  0xa4   :  { %vm88_vm5 = vcmp.eq.s32.totalorder %v87_v36, %v53_v28  ;;  %vm95_vm6 = vcmp.eq.s32.totalorder %v94_v37, %v53_v28 }
  0xa5   :  { %v84_v39 = vadd.f32 %v348_v38, %v77_v35  ;;  %v349_v40 = vsel %vm88_vm5, 1.0, %v517_v2  ;;  %v350_v42 = vsel %vm95_vm6, 1.0, %v517_v2 }
  0xa7   :  { %v91_v41 = vadd.f32 %v349_v40, %v84_v39 }
  0xa8   :  { %v101_v43 = vpop.permute.xlu1 %100 }
  0xa9   :  { %vm102_vm7 = vcmp.eq.s32.totalorder %v101_v43, %v53_v28  ;;  %v98_v44 = vadd.f32 %v350_v42, %v91_v41 }
  0xaa   :  { %v351_v45 = vsel %vm102_vm7, 1.0, %v517_v2 }
  0xab   :  { %v105_v47 = vadd.f32 %v351_v45, %v98_v44 }
  0xad   :  { %v108_v46 = vpop.permute.xlu1 %107 }
  0xae   :  { %vm109_vm8 = vcmp.eq.s32.totalorder %v108_v46, %v53_v28 }
  0xaf   :  { %v352_v48 = vsel %vm109_vm8, 1.0, %v517_v2 }
  0xb0   :  { %v112_v49 = vadd.f32 %v352_v48, %v105_v47 }
  0xb2   :  { %v114_v50 = vpack.c.bf16 %v112_v49, %v112_v49 }
  0xb4   :  { %405 = vmatmul.mubr.bf16.vlgmr.msra.gmra.mxu0 %v114_v50 }
 0x174   :  { %v213_v52 = vpop.f32.mrf.mxu0 }
 0x175   :  { %v225_v53 = vmul.f32 0.125, %v213_v52 }
 0x176   :  { %v406_v54 = vpop.f32.mrf.mxu0 }
 0x177   :  { %v226_v55 = vpack.c.bf16 %v225_v53, %v225_v53 }
 0x178   :  { %v216_v56 = vpop.f32.mrf.mxu0 }
 0x179   :  { %425 = vmatmul.mubr.bf16.vlgmr.msra.gmra.mxu1 %v226_v55 }
 0x17a   :  { %v407_v57 = vpop.f32.mrf.mxu0 }
 0x239   :  { %v332_v59 = vpop.f32.mrf.mxu1 }
 0x23a   :  { %v333_v60 = vadd.f32 %v361_v58, %v332_v59 }
 0x23b   :  { %v426_v61 = vpop.f32.mrf.mxu1 }
 0x23c   :  { %338 = vst [vmem:[%s595_s4] sm:$0xff] %v333_v60 }
 0x23d   :  { %v335_v62 = vpop.f32.mrf.mxu1 }
 0x23f   :  { %v427_v63 = vpop.f32.mrf.mxu1 }
 0x240   :  { %343 = vsyncpa [#allocation4], 1 }
 0x241   :  { %344 = vsyncpa [#allocation6], 1 }

</bundles_post_ra>
